<compile_context>
chip_gen: v7x
topology: tpu7x:2x2x1
jax: 0.10.0
libtpu: 0.0.40
codegen_flags: <defaults>
</compile_context>

<pallas_src>
import functools
import math

import jax
import jax.numpy as jnp
from jax.experimental import pallas as pl
from jax.experimental.pallas import tpu as pltpu

LANE_ALIGNS = (256, 128)   # prefer 256-wide tiles for the v6e/v7x MXU, fall back to 128
SUB_ALIGNS = (8,)
VMEM_LIMIT = 48 * 1024 * 1024   # explicit scoped-VMEM budget (fits v7x 64 MiB physical)


# ---------------------------------------------------------------------------
# Small helpers
# ---------------------------------------------------------------------------

def _round_up(n, m):
    return ((n + m - 1) // m) * m


def _pick_tile(dim, target, aligns):
    """Largest tile <= target that divides `dim` and is a multiple of one of `aligns`
    (tried in order); falls back to the full dimension (always legal for BlockSpec).
    NOTE: the full-dim fallback is only safe because GPT-2 shapes (768/2304/3072, B*S)
    have aligned divisors; awkward shapes should be padded by the caller."""
    if dim <= target:
        return dim
    for align in aligns:
        t = (target // align) * align
        while t >= align:
            if dim % t == 0:
                return t
            t -= align
    return dim


def _heads_per_block(n_head, dh):
    """Smallest head group whose packed width hg*dh is a multiple of 128 lanes
    (falls back to all heads, i.e. the full hidden width)."""
    for hg in range(1, n_head + 1):
        if n_head % hg == 0 and (hg * dh) % 128 == 0:
            return hg
    return n_head


def _apply_activation(y, activation):
    if activation == "tanh":
        return jnp.tanh(y)
    if activation == "gelu":                     # GPT-2 "gelu_new" (tanh approximation)
        c = 0.7978845608028654                   # sqrt(2/pi)
        return 0.5 * y * (1.0 + jnp.tanh(c * (y + 0.044715 * y * y * y)))
    return y


def _cparams(dims):
    return pltpu.CompilerParams(dimension_semantics=dims,
                                vmem_limit_bytes=VMEM_LIMIT)


# ---------------------------------------------------------------------------
# Fused LayerNorm -> Linear (LN hoisted out of the N loop)
# ---------------------------------------------------------------------------

def _ln_linear_kernel(x_ref, g_ref, b_ref, w_ref, bias_ref, o_ref, xn_ref,
                      *, activation, eps):
    # Normalize the row tile once per M tile (j == 0), reuse for every N tile.
    @pl.when(pl.program_id(1) == 0)
    def _():
        x = x_ref[...]                                    # (tm, K) f32
        mu = jnp.mean(x, axis=-1, keepdims=True)
        xc = x - mu
        var = jnp.mean(xc * xc, axis=-1, keepdims=True)
        h = xc * jax.lax.rsqrt(var + eps) * g_ref[...] + b_ref[...]
        xn_ref[...] = h.astype(jnp.bfloat16)

    y = jnp.dot(xn_ref[...], w_ref[...], preferred_element_type=jnp.float32)
    y = _apply_activation(y + bias_ref[...], activation)
    o_ref[...] = y.astype(o_ref.dtype)


def fused_ln_linear(x, gamma, beta, w, b, activation=None, out_dtype=jnp.bfloat16,
                    eps=1e-5, tm_target=512, tn_target=256):
    """out = act(LayerNorm(x) @ W + b).  K (=H) is kept whole (LN needs the full row);
    tiled over M and N, w is bf16, output dtype selectable (bf16 for intermediates)."""
    M, K = x.shape
    N = w.shape[1]
    tm = _pick_tile(M, tm_target, SUB_ALIGNS)
    tn = _pick_tile(N, tn_target, LANE_ALIGNS)
    kernel = functools.partial(_ln_linear_kernel, activation=activation, eps=eps)
    return pl.pallas_call(
        kernel,
        out_shape=jax.ShapeDtypeStruct((M, N), out_dtype),
        grid=(M // tm, N // tn),
        in_specs=[
            pl.BlockSpec((tm, K), lambda i, j: (i, 0)),     # resident across j
            pl.BlockSpec((1, K), lambda i, j: (0, 0)),
            pl.BlockSpec((1, K), lambda i, j: (0, 0)),
            pl.BlockSpec((K, tn), lambda i, j: (0, j)),
            pl.BlockSpec((1, tn), lambda i, j: (0, j)),
        ],
        out_specs=pl.BlockSpec((tm, tn), lambda i, j: (i, j)),
        scratch_shapes=[pltpu.VMEM((tm, K), jnp.bfloat16)],
        compiler_params=_cparams(("parallel", "arbitrary")),
    )(x, gamma.reshape(1, K), beta.reshape(1, K), w, b.reshape(1, N))


# ---------------------------------------------------------------------------
# Tiled linear (+bias, +optional activation, +optional fused residual add)
# Accumulates directly in the resident f32 output block (no extra scratch).
# ---------------------------------------------------------------------------

def _linear_kernel(x_ref, w_ref, b_ref, *rest, activation, has_residual):
    if has_residual:
        res_ref, o_ref = rest
    else:
        (o_ref,) = rest

    k = pl.program_id(2)

    @pl.when(k == 0)
    def _():
        o_ref[...] = jnp.zeros_like(o_ref)

    o_ref[...] += jnp.dot(x_ref[...].astype(jnp.bfloat16), w_ref[...],
                          preferred_element_type=jnp.float32)

    @pl.when(k == pl.num_programs(2) - 1)
    def _():
        y = _apply_activation(o_ref[...] + b_ref[...], activation)
        if has_residual:
            y = y + res_ref[...]
        o_ref[...] = y


def pallas_linear(x, w, b, activation=None, residual=None,
                  tm_target=512, tn_target=256, tk_target=512):
    """x @ W + b (+act) (+residual), W pre-cast to bf16, output f32 (residual stream)."""
    M, K = x.shape
    N = w.shape[1]
    tm = _pick_tile(M, tm_target, SUB_ALIGNS)
    tn = _pick_tile(N, tn_target, LANE_ALIGNS)
    tk = _pick_tile(K, tk_target, LANE_ALIGNS)

    in_specs = [
        pl.BlockSpec((tm, tk), lambda i, j, k: (i, k)),
        pl.BlockSpec((tk, tn), lambda i, j, k: (k, j)),
        pl.BlockSpec((1, tn), lambda i, j, k: (0, j)),
    ]
    args = [x, w, b.reshape(1, N)]
    has_residual = residual is not None
    if has_residual:
        in_specs.append(pl.BlockSpec((tm, tn), lambda i, j, k: (i, j)))
        args.append(residual)
    kernel = functools.partial(_linear_kernel, activation=activation,
                               has_residual=has_residual)

    return pl.pallas_call(
        kernel,
        out_shape=jax.ShapeDtypeStruct((M, N), jnp.float32),
        grid=(M // tm, N // tn, K // tk),
        in_specs=in_specs,
        out_specs=pl.BlockSpec((tm, tn), lambda i, j, k: (i, j)),
        compiler_params=_cparams(("parallel", "parallel", "arbitrary")),
    )(*args)


# ---------------------------------------------------------------------------
# Attention: query-tiled, per-head-block packed [q|k|v] columns, scale folded
# into the Q weights offline; KV slab stays resident across the query axis.
# ---------------------------------------------------------------------------

def _attn_kernel(mask_ref, q_ref, kv_ref, o_ref, *, hg, dh):
    hd = hg * dh
    tq = q_ref.shape[0]
    S = kv_ref.shape[0]

    row0 = pl.program_id(2) * tq
    rows = row0 + jax.lax.broadcasted_iota(jnp.int32, (tq, S), 0)
    cols = jax.lax.broadcasted_iota(jnp.int32, (tq, S), 1)
    pad_ok = mask_ref[...] > 0.5                          # (1, S) key padding mask
    allowed = jnp.logical_and(cols <= rows, pad_ok)       # (tq, S)
    neg = jnp.float32(-1e30)

    outs = []
    for h in range(hg):                                   # small, unrolled at trace time
        qh = q_ref[:, h * dh:(h + 1) * dh]                       # (tq, dh) bf16
        kh = kv_ref[:, hd + h * dh:hd + (h + 1) * dh]            # (S, dh) bf16
        vh = kv_ref[:, 2 * hd + h * dh:2 * hd + (h + 1) * dh]    # (S, dh) bf16

        s = jax.lax.dot_general(qh, kh, (((1,), (1,)), ((), ())),
                                preferred_element_type=jnp.float32)   # (tq, S) f32
        s = jnp.where(allowed, s, neg)
        # NOTE: right-padding only — row 0 of each query tile always has at least one
        # allowed key (causal col 0), so no fully-masked softmax rows occur.
        mx = jnp.max(s, axis=-1, keepdims=True)
        e = jnp.exp(s - mx)
        p = e * pl.reciprocal(jnp.sum(e, axis=-1, keepdims=True), approx=True)
        outs.append(jnp.dot(p.astype(jnp.bfloat16), vh,
                            preferred_element_type=jnp.float32).astype(o_ref.dtype))
    o_ref[...] = jnp.concatenate(outs, axis=-1)           # single lane-dense store


def pallas_attention(qkv3, attention_mask, n_head, dh, hg, tq_target=256):
    """qkv3: (B, S, 3H) bf16 with columns packed per head-block as [q | k | v]."""
    B, S, threeH = qkv3.shape
    H = threeH // 3
    n_blk = n_head // hg
    hd = hg * dh
    tq = _pick_tile(S, tq_target, SUB_ALIGNS)
    mask3 = attention_mask.astype(jnp.float32).reshape(B, 1, S)
    kernel = functools.partial(_attn_kernel, hg=hg, dh=dh)
    return pl.pallas_call(
        kernel,
        out_shape=jax.ShapeDtypeStruct((B, S, H), jnp.bfloat16),
        grid=(B, n_blk, S // tq),
        in_specs=[
            pl.BlockSpec((None, 1, S), lambda b, h, qi: (b, 0, 0)),
            pl.BlockSpec((None, tq, 3 * hd), lambda b, h, qi: (b, qi, h)),  # q rows
            pl.BlockSpec((None, S, 3 * hd), lambda b, h, qi: (b, 0, h)),    # kv (resident)
        ],
        out_specs=pl.BlockSpec((None, tq, hd), lambda b, h, qi: (b, qi, h)),
        compiler_params=_cparams(("parallel", "parallel", "parallel")),
    )(mask3, qkv3, qkv3)


# ---------------------------------------------------------------------------
# Fused final LayerNorm + masked-mean pooling (one pass over the sequence output)
# ---------------------------------------------------------------------------

def _lnf_pool_kernel(x_ref, g_ref, b_ref, m_ref, seq_ref, pool_ref, *, eps):
    x = x_ref[...]                                        # (S, H) f32
    mu = jnp.mean(x, axis=-1, keepdims=True)
    xc = x - mu
    var = jnp.mean(xc * xc, axis=-1, keepdims=True)
    y = xc * jax.lax.rsqrt(var + eps) * g_ref[...] + b_ref[...]
    seq_ref[...] = y.astype(seq_ref.dtype)

    m = m_ref[...]                                        # (1, S)
    s = jnp.dot(m, y, preferred_element_type=jnp.float32)  # masked row-sum (1, H)
    denom = jnp.maximum(jnp.sum(m), 1e-9)                 # clamp (fully-padded guard)
    pool_ref[...] = s / denom


def pallas_lnf_and_pool(x2d, gamma, beta, attention_mask, B, S, eps=1e-5):
    H = x2d.shape[1]
    mask3 = attention_mask.astype(jnp.float32).reshape(B, 1, S)
    kernel = functools.partial(_lnf_pool_kernel, eps=eps)
    seq, pooled = pl.pallas_call(
        kernel,
        out_shape=(jax.ShapeDtypeStruct((B, S, H), jnp.bfloat16),
                   jax.ShapeDtypeStruct((B, 1, H), jnp.float32)),
        grid=(B,),
        in_specs=[
            pl.BlockSpec((None, S, H), lambda b: (b, 0, 0)),
            pl.BlockSpec((1, H), lambda b: (0, 0)),
            pl.BlockSpec((1, H), lambda b: (0, 0)),
            pl.BlockSpec((None, 1, S), lambda b: (b, 0, 0)),
        ],
        out_specs=[pl.BlockSpec((None, S, H), lambda b: (b, 0, 0)),
                   pl.BlockSpec((None, 1, H), lambda b: (b, 0, 0))],
        compiler_params=_cparams(("parallel",)),
    )(x2d.reshape(B, S, H), gamma.reshape(1, H), beta.reshape(1, H), mask3)
    return seq, pooled.reshape(B, H)


# ---------------------------------------------------------------------------
# Fused two-layer task head: logits = tanh(x @ W1 + b1) @ W2 + b2
# (hidden stays in VMEM; W2 output width is pre-padded to 128 lanes offline)
# ---------------------------------------------------------------------------

def _head2_kernel(x_ref, w1_ref, b1_ref, w2_ref, b2_ref, o_ref):
    h = jnp.tanh(jnp.dot(x_ref[...].astype(jnp.bfloat16), w1_ref[...],
                         preferred_element_type=jnp.float32) + b1_ref[...])
    o_ref[...] = jnp.dot(h.astype(jnp.bfloat16), w2_ref[...],
                         preferred_element_type=jnp.float32) + b2_ref[...]


def pallas_head2(x, w1, b1, w2, b2, tm_target=512):
    M, K = x.shape
    N1 = w1.shape[1]
    N2 = w2.shape[1]
    tm = _pick_tile(M, tm_target, SUB_ALIGNS)
    return pl.pallas_call(
        _head2_kernel,
        out_shape=jax.ShapeDtypeStruct((M, N2), jnp.float32),
        grid=(M // tm,),
        in_specs=[
            pl.BlockSpec((tm, K), lambda i: (i, 0)),
            pl.BlockSpec((K, N1), lambda i: (0, 0)),
            pl.BlockSpec((1, N1), lambda i: (0, 0)),
            pl.BlockSpec((N1, N2), lambda i: (0, 0)),
            pl.BlockSpec((1, N2), lambda i: (0, 0)),
        ],
        out_specs=pl.BlockSpec((tm, N2), lambda i: (i, 0)),
        compiler_params=_cparams(("parallel",)),
    )(x, w1, b1.reshape(1, N1), w2, b2.reshape(1, N2))


# ---------------------------------------------------------------------------
# Parameter init (deterministic, synthetic — stands in for pretrained GPT-2)
# ---------------------------------------------------------------------------

def _dense(key, fan_in, fan_out):
    w = 0.02 * jax.random.normal(key, (fan_in, fan_out), jnp.float32)
    b = jnp.zeros((fan_out,), jnp.float32)
    return w, b


def init_params(key, cfg):
    H = cfg["H"]
    k_emb, k_blocks, k_heads = jax.random.split(key, 3)
    ke1, ke2 = jax.random.split(k_emb)
    params = {
        "wte": 0.02 * jax.random.normal(ke1, (cfg["vocab"], H), jnp.float32),
        "wpe": 0.01 * jax.random.normal(ke2, (cfg["n_pos"], H), jnp.float32),
        "ln_f_g": jnp.ones((H,), jnp.float32),
        "ln_f_b": jnp.zeros((H,), jnp.float32),
    }
    blocks = []
    for bk in jax.random.split(k_blocks, cfg["n_layer"]):
        k1, k2, k3, k4 = jax.random.split(bk, 4)
        attn_w, attn_b = _dense(k1, H, 3 * H)   # columns laid out [Q | K | V]
        proj_w, proj_b = _dense(k2, H, H)
        fc_w, fc_b = _dense(k3, H, 4 * H)
        out_w, out_b = _dense(k4, 4 * H, H)
        blocks.append({
            "ln1_g": jnp.ones((H,), jnp.float32), "ln1_b": jnp.zeros((H,), jnp.float32),
            "ln2_g": jnp.ones((H,), jnp.float32), "ln2_b": jnp.zeros((H,), jnp.float32),
            "attn_w": attn_w, "attn_b": attn_b,
            "proj_w": proj_w, "proj_b": proj_b,
            "fc_w": fc_w, "fc_b": fc_b,
            "out_w": out_w, "out_b": out_b,
        })
    params["blocks"] = blocks

    def head_params(k, n_out):
        k1, k2 = jax.random.split(k)
        w1, b1 = _dense(k1, H, H)
        w2, b2 = _dense(k2, H, n_out)
        return {"w1": w1, "b1": b1, "w2": w2, "b2": b2}

    h1, h2, h3 = jax.random.split(k_heads, 3)
    params["intent_head"] = head_params(h1, cfg["num_intents"])
    params["category_head"] = head_params(h2, cfg["num_categories"])
    params["ner_head"] = head_params(h3, cfg["num_ner_labels"])
    return params


def pack_params_for_tpu(params, cfg):
    """Offline weight repacking (mathematically identity):
      * fold the 1/sqrt(dh) attention scale into the Q columns of attn_w/attn_b;
      * permute each attn_w/attn_b into per-head-block [q|k|v] column groups (head-block
        width is a multiple of 128 lanes when possible);
      * cast every weight matrix to bf16 (biases/LN params stay f32);
      * fuse the two pooled task heads into one block-diagonal head and pad the tiny
        logit widths up to 128 lanes (avoids masked partial stores)."""
    H, n_head = cfg["H"], cfg["n_head"]
    dh = H // n_head
    hg = _heads_per_block(n_head, dh)
    n_blk = n_head // hg
    hd = hg * dh
    scale = 1.0 / math.sqrt(dh)

    perm = []
    for blk_i in range(n_blk):
        for t in range(3):                       # q, k, v
            base = t * H + blk_i * hd
            perm.extend(range(base, base + hd))
    perm = jnp.asarray(perm, jnp.int32)

    blocks = []
    for blk in params["blocks"]:
        aw = jnp.concatenate([blk["attn_w"][:, :H] * scale, blk["attn_w"][:, H:]], axis=1)
        ab = jnp.concatenate([blk["attn_b"][:H] * scale, blk["attn_b"][H:]])
        nb = dict(blk)
        nb["attn_w"] = aw[:, perm].astype(jnp.bfloat16)
        nb["attn_b"] = ab[perm]
        nb["proj_w"] = blk["proj_w"].astype(jnp.bfloat16)
        nb["fc_w"] = blk["fc_w"].astype(jnp.bfloat16)
        nb["out_w"] = blk["out_w"].astype(jnp.bfloat16)
        blocks.append(nb)

    ih, ch, nh = params["intent_head"], params["category_head"], params["ner_head"]
    ni, nc, nn_ = cfg["num_intents"], cfg["num_categories"], cfg["num_ner_labels"]

    pool_w1 = jnp.concatenate([ih["w1"], ch["w1"]], axis=1)      # (H, 2H)
    pool_b1 = jnp.concatenate([ih["b1"], ch["b1"]])
    n_pool = _round_up(ni + nc, 128)
    pool_w2 = jnp.zeros((2 * H, n_pool), jnp.float32)
    pool_w2 = pool_w2.at[:H, :ni].set(ih["w2"])
    pool_w2 = pool_w2.at[H:, ni:ni + nc].set(ch["w2"])
    pool_b2 = jnp.zeros((n_pool,), jnp.float32)
    pool_b2 = pool_b2.at[:ni].set(ih["b2"])
    pool_b2 = pool_b2.at[ni:ni + nc].set(ch["b2"])

    n_ner = _round_up(nn_, 128)
    ner_w2 = jnp.zeros((H, n_ner), jnp.float32).at[:, :nn_].set(nh["w2"])
    ner_b2 = jnp.zeros((n_ner,), jnp.float32).at[:nn_].set(nh["b2"])

    return {
        "wte": params["wte"], "wpe": params["wpe"],
        "ln_f_g": params["ln_f_g"], "ln_f_b": params["ln_f_b"],
        "blocks": blocks,
        "pool_w1": pool_w1.astype(jnp.bfloat16), "pool_b1": pool_b1,
        "pool_w2": pool_w2.astype(jnp.bfloat16), "pool_b2": pool_b2,
        "ner_w1": nh["w1"].astype(jnp.bfloat16), "ner_b1": nh["b1"],
        "ner_w2": ner_w2.astype(jnp.bfloat16), "ner_b2": ner_b2,
        "hg": hg,
    }


# ---------------------------------------------------------------------------
# Model forward (GPT-2 backbone + three task heads)
# ---------------------------------------------------------------------------

def gpt2_forward(packed, input_ids, attention_mask, cfg):
    B, S = input_ids.shape
    H, n_head = cfg["H"], cfg["n_head"]
    dh = H // n_head
    hg = packed["hg"]

    # glue: embedding gather stays in plain JAX (data-dependent gather).
    x = packed["wte"][input_ids] + packed["wpe"][jnp.arange(S)][None, :, :]
    x2d = x.reshape(B * S, H).astype(jnp.float32)
    # embedding dropout: identity (eval mode)

    for blk in packed["blocks"]:
        # --- attention sub-block: LN fused into QKV projection, residual fused into proj
        qkv = fused_ln_linear(x2d, blk["ln1_g"], blk["ln1_b"],
                              blk["attn_w"], blk["attn_b"])              # (B*S, 3H) bf16
        a = pallas_attention(qkv.reshape(B, S, 3 * H), attention_mask,
                             n_head, dh, hg)                             # (B, S, H) bf16
        x2d = pallas_linear(a.reshape(B * S, H), blk["proj_w"], blk["proj_b"],
                            residual=x2d)                                # f32 residual

        # --- MLP sub-block: LN fused into fc, residual fused into out projection
        m = fused_ln_linear(x2d, blk["ln2_g"], blk["ln2_b"],
                            blk["fc_w"], blk["fc_b"], activation="gelu")  # (B*S, 4H) bf16
        x2d = pallas_linear(m, blk["out_w"], blk["out_b"], residual=x2d)

    # final LayerNorm fused with masked-mean pooling (single pass over the sequence)
    seq_out, pooled = pallas_lnf_and_pool(x2d, packed["ln_f_g"], packed["ln_f_b"],
                                          attention_mask, B, S)
    return seq_out, pooled                                   # (B,S,H) bf16, (B,H) f32


def model_forward(packed, input_ids, attention_mask, cfg):
    B, S = input_ids.shape
    H = cfg["H"]
    ni, nc, nn_ = cfg["num_intents"], cfg["num_categories"], cfg["num_ner_labels"]

    seq_out, pooled = gpt2_forward(packed, input_ids, attention_mask, cfg)

    # Fused intent+category heads (block-diagonal second layer, padded to 128 lanes).
    pooled_logits = pallas_head2(pooled, packed["pool_w1"], packed["pool_b1"],
                                 packed["pool_w2"], packed["pool_b2"])
    intent_logits = pooled_logits[:, :ni]
    category_logits = pooled_logits[:, ni:ni + nc]

    # NER head over every token (two layers fused, second layer padded to 128 lanes).
    ner_pad = pallas_head2(seq_out.reshape(B * S, H), packed["ner_w1"], packed["ner_b1"],
                           packed["ner_w2"], packed["ner_b2"])
    ner_logits = ner_pad.reshape(B, S, -1)[:, :, :nn_]

    # nn.Dropout layers: identity in eval mode.
    # TODO(synk): optional CrossEntropyLoss branch (labels were None in this run).
    return {
        "intent_logits": intent_logits,
        "category_logits": category_logits,
        "ner_logits": ner_logits,
    }


# ---------------------------------------------------------------------------
# Main
# ---------------------------------------------------------------------------

if __name__ == "__main__":
    cfg = dict(vocab=50, n_pos=16, H=32, n_layer=2, n_head=4,
               num_intents=5, num_categories=7, num_ner_labels=9)

    key = jax.random.PRNGKey(0)
    k_params, k_data = jax.random.split(key)
    params = init_params(k_params, cfg)
    packed = pack_params_for_tpu(params, cfg)

    B, S = 2, 8
    input_ids = jax.random.randint(k_data, (B, S), 0, cfg["vocab"], dtype=jnp.int32)
    attention_mask = jnp.array(
        [[1, 1, 1, 1, 1, 1, 1, 1],
         [1, 1, 1, 1, 1, 1, 0, 0]], dtype=jnp.int32)

    out = model_forward(packed, input_ids, attention_mask, cfg)
    out = jax.block_until_ready(out)

    assert out["intent_logits"].shape == (B, cfg["num_intents"])
    assert out["category_logits"].shape == (B, cfg["num_categories"])
    assert out["ner_logits"].shape == (B, S, cfg["num_ner_labels"])
    assert all(bool(jnp.all(jnp.isfinite(v))) for v in out.values())

    print("KERNEL_OK")
</pallas_src>

<mosaic_0001>
module attributes {stable_mosaic.version = 11 : i64} {
  func.func @_ln_linear_kernel(%arg0: i32, %arg1: i32, %arg2: memref<16x32xf32, #tpu.memory_space<vmem>>, %arg3: memref<1x32xf32, #tpu.memory_space<vmem>>, %arg4: memref<1x32xf32, #tpu.memory_space<vmem>>, %arg5: memref<32x96xbf16, #tpu.memory_space<vmem>>, %arg6: memref<1x96xf32, #tpu.memory_space<vmem>>, %arg7: memref<16x96xbf16, #tpu.memory_space<vmem>>, %arg8: memref<16x32xbf16, #tpu.memory_space<vmem>>) attributes {dimension_semantics = [#tpu.dimension_semantics<parallel>, #tpu.dimension_semantics<arbitrary>], iteration_bounds = array<i64: 1, 1>, scalar_prefetch = 0 : i64, scratch_operands = 1 : i64, tpu.core_type = #tpu.core_type<tc>, window_params = [{transform_indices = @transform_0, window_bounds = array<i64: 16, 32>}, {pipeline_mode = #tpu.pipeline_mode<synchronous>, transform_indices = @transform_1, window_bounds = array<i64: 1, 32>}, {pipeline_mode = #tpu.pipeline_mode<synchronous>, transform_indices = @transform_2, window_bounds = array<i64: 1, 32>}, {transform_indices = @transform_3, window_bounds = array<i64: 32, 96>}, {transform_indices = @transform_4, window_bounds = array<i64: 1, 96>}, {transform_indices = @transform_5, window_bounds = array<i64: 16, 96>}]} {
    %c0_i32 = arith.constant 0 : i32
    %0 = arith.cmpi eq, %arg1, %c0_i32 : i32
    %1 = arith.extui %0 : i1 to i32
    %c0_i32_0 = arith.constant 0 : i32
    %2 = arith.cmpi ne, %1, %c0_i32_0 : i32
    scf.if %2 {
      %c0_8 = arith.constant 0 : index
      %c0_9 = arith.constant 0 : index
      %11 = vector.load %arg2[%c0_8, %c0_9] : memref<16x32xf32, #tpu.memory_space<vmem>>, vector<16x32xf32>
      %cst_10 = arith.constant dense<0.000000e+00> : vector<16xf32>
      %12 = vector.multi_reduction <add>, %11, %cst_10 [1] : vector<16x32xf32> to vector<16xf32>
      %13 = vector.shape_cast %12 : vector<16xf32> to vector<16x1xf32>
      %cst_11 = arith.constant 3.200000e+01 : f32
      %14 = vector.broadcast %cst_11 : f32 to vector<16x1xf32>
      %15 = arith.divf %13, %14 : vector<16x1xf32>
      %16 = vector.broadcast %15 : vector<16x1xf32> to vector<16x32xf32>
      %17 = arith.subf %11, %16 : vector<16x32xf32>
      %18 = arith.mulf %17, %17 : vector<16x32xf32>
      %cst_12 = arith.constant dense<0.000000e+00> : vector<16xf32>
      %19 = vector.multi_reduction <add>, %18, %cst_12 [1] : vector<16x32xf32> to vector<16xf32>
      %20 = vector.shape_cast %19 : vector<16xf32> to vector<16x1xf32>
      %cst_13 = arith.constant 3.200000e+01 : f32
      %21 = vector.broadcast %cst_13 : f32 to vector<16x1xf32>
      %22 = arith.divf %20, %21 : vector<16x1xf32>
      %cst_14 = arith.constant 9.99999974E-6 : f32
      %23 = vector.broadcast %cst_14 : f32 to vector<16x1xf32>
      %24 = arith.addf %22, %23 : vector<16x1xf32>
      %25 = math.rsqrt %24 : vector<16x1xf32>
      %26 = vector.broadcast %25 : vector<16x1xf32> to vector<16x32xf32>
      %27 = arith.mulf %17, %26 : vector<16x32xf32>
      %c0_15 = arith.constant 0 : index
      %c0_16 = arith.constant 0 : index
      %28 = vector.load %arg3[%c0_15, %c0_16] : memref<1x32xf32, #tpu.memory_space<vmem>>, vector<1x32xf32>
      %29 = vector.broadcast %28 : vector<1x32xf32> to vector<16x32xf32>
      %30 = arith.mulf %27, %29 : vector<16x32xf32>
      %c0_17 = arith.constant 0 : index
      %c0_18 = arith.constant 0 : index
      %31 = vector.load %arg4[%c0_17, %c0_18] : memref<1x32xf32, #tpu.memory_space<vmem>>, vector<1x32xf32>
      %32 = vector.broadcast %31 : vector<1x32xf32> to vector<16x32xf32>
      %33 = arith.addf %30, %32 : vector<16x32xf32>
      %34 = arith.truncf %33 : vector<16x32xf32> to vector<16x32xbf16>
      %c0_19 = arith.constant 0 : index
      %c0_20 = arith.constant 0 : index
      %35 = vector.load %arg8[%c0_19, %c0_20] : memref<16x32xbf16, #tpu.memory_space<vmem>>, vector<16x32xbf16>
      tpu.vector_store %arg8[%c0_19, %c0_20], %34 {strides = array<i32>} : memref<16x32xbf16, #tpu.memory_space<vmem>>, vector<16x32xbf16>,
    } else {
    }
    %c0 = arith.constant 0 : index
    %c0_1 = arith.constant 0 : index
    %3 = vector.load %arg8[%c0, %c0_1] : memref<16x32xbf16, #tpu.memory_space<vmem>>, vector<16x32xbf16>
    %c0_2 = arith.constant 0 : index
    %c0_3 = arith.constant 0 : index
    %4 = vector.load %arg5[%c0_2, %c0_3] : memref<32x96xbf16, #tpu.memory_space<vmem>>, vector<32x96xbf16>
    %cst = arith.constant dense<0.000000e+00> : vector<16x96xf32>
    %5 = tpu.matmul %3, %4, %cst {dimension_numbers = #tpu.dot_dimension_numbers<[1], [0], [0], [1], [0, 0, 1, 1], [], []>} : vector<16x32xbf16>, vector<32x96xbf16>, vector<16x96xf32> -> vector<16x96xf32>
    %c0_4 = arith.constant 0 : index
    %c0_5 = arith.constant 0 : index
    %6 = vector.load %arg6[%c0_4, %c0_5] : memref<1x96xf32, #tpu.memory_space<vmem>>, vector<1x96xf32>
    %7 = vector.broadcast %6 : vector<1x96xf32> to vector<16x96xf32>
    %8 = arith.addf %5, %7 : vector<16x96xf32>
    %9 = arith.truncf %8 : vector<16x96xf32> to vector<16x96xbf16>
    %c0_6 = arith.constant 0 : index
    %c0_7 = arith.constant 0 : index
    %10 = vector.load %arg7[%c0_6, %c0_7] : memref<16x96xbf16, #tpu.memory_space<vmem>>, vector<16x96xbf16>
    tpu.vector_store %arg7[%c0_6, %c0_7], %9 {strides = array<i32>} : memref<16x96xbf16, #tpu.memory_space<vmem>>, vector<16x96xbf16>,
    return
  }
  func.func @transform_0(%arg0: i32, %arg1: i32) -> (i32, i32) {
    %c0_i32 = arith.constant 0 : i32
    %c0_i32_0 = arith.constant 0 : i32
    return %arg0, %c0_i32 : i32, i32
  }
  func.func @transform_1(%arg0: i32, %arg1: i32) -> (i32, i32) {
    %c0_i32 = arith.constant 0 : i32
    %c0_i32_0 = arith.constant 0 : i32
    %c0_i32_1 = arith.constant 0 : i32
    return %c0_i32, %c0_i32_0 : i32, i32
  }
  func.func @transform_2(%arg0: i32, %arg1: i32) -> (i32, i32) {
    %c0_i32 = arith.constant 0 : i32
    %c0_i32_0 = arith.constant 0 : i32
    %c0_i32_1 = arith.constant 0 : i32
    return %c0_i32, %c0_i32_0 : i32, i32
  }
  func.func @transform_3(%arg0: i32, %arg1: i32) -> (i32, i32) {
    %c0_i32 = arith.constant 0 : i32
    %c0_i32_0 = arith.constant 0 : i32
    return %c0_i32, %arg1 : i32, i32
  }
  func.func @transform_4(%arg0: i32, %arg1: i32) -> (i32, i32) {
    %c0_i32 = arith.constant 0 : i32
    %c0_i32_0 = arith.constant 0 : i32
    return %c0_i32, %arg1 : i32, i32
  }
  func.func @transform_5(%arg0: i32, %arg1: i32) -> (i32, i32) {
    %c0_i32 = arith.constant 0 : i32
    return %arg0, %arg1 : i32, i32
  }
}

</mosaic_0001>

<bundles_post_ra>
// kernel: tpu_custom_call.1
= control target key start
LH: loop header
LB: loop body
LE: loop exit
PB: predicated region body
PF: predicated region fallthrough
CT: control target
= control target key end

     0   :  { %10 = vsyncpa [#allocation4], 0  ;;  %s406_s0 = inlined_call_operand.hbm [shape: f32[16,32], index: 0, kind: input, shape index: {}]   ;;  %s407_s1 = inlined_call_operand.vmem [shape: f32[1,32], index: 1, kind: input, shape index: {}]   ;;  %s408_s2 = inlined_call_operand.vmem [shape: f32[1,32], index: 2, kind: input, shape index: {}]   ;;  %s409_s3 = inlined_call_operand.hbm [shape: bf16[32,96], index: 3, kind: input, shape index: {}]   ;;  %s410_s4 = inlined_call_operand.vmem [shape: f32[1,96], index: 4, kind: input, shape index: {}]   ;;  %s411_s5 = inlined_call_operand.hbm [shape: bf16[16,96], index: 5, kind: output, shape index: {}]  }
   0x1   :  { %11 = vsyncpa [#allocation7], 0 }
   0x2   :  { %12 = vsyncpa [#allocation5], 0  ;;  %s310_s18 = smov [#allocation3]   ;;  %s238_s22 = scalar_lea.hbm %s406_s0, 256 }
   0x3   :  { %s18_s19 = sshll.u32 %s310_s18, 4  ;;  %p239_p0 = scmp.ne.s32.totalorder %s406_s0, %s238_s22  ;;  %s19_s19 = int_to_ptr.vmem [resolvable:$true] %s18_s19 }
   0x4   :  { %p242_p1 = scmp.lt.u32.totalorder %s238_s22, %s406_s0 }
   0x6   :  { %p244_p2 = pnand %p242_p1, %p239_p0 }
   0x8   :  { %247 = shalt.err (!%p244_p2)
}
   0x9   :  { %s248_s27 = scalar_lea.vmem %s19_s19, 256  ;;  %p253_p4 = scmp.lt.s32.totalorder %s19_s19, %s19_s19 }
   0xa   :  { %p249_p3 = scmp.ne.s32.totalorder %s19_s19, %s248_s27  ;;  %p254_p5 = scmp.lt.s32.totalorder %s248_s27, %s248_s27 }
   0xc   :  { %p255_p6 = por %p254_p5, %p253_p4 }
   0xe   :  { %p256_p7 = pnand %p255_p6, %p249_p3 }
  0x10   :  { %259 = shalt.err (!%p256_p7)
}
  0x11   :  { %s311_s28 = smov 128   ;;  %s312_s29 = smov 8  }
  0x12   :  { %24 = dma.hbm_to_vmem [thread:$0]  %s406_s0, 256, %s19_s19, [#allocation4], %s311_s28, %s311_s28, %s312_s29  }
  0x13   :  { %s313_s7 = smov [#allocation6]   ;;  %s260_s11 = scalar_lea.hbm %s409_s3, 256 }
  0x14   :  { %s34_s8 = sshll.u32 %s313_s7, 4  ;;  %p261_p8 = scmp.ne.s32.totalorder %s409_s3, %s260_s11  ;;  %s35_s8 = int_to_ptr.vmem [resolvable:$true] %s34_s8 }
  0x15   :  { %p264_p9 = scmp.lt.u32.totalorder %s260_s11, %s409_s3 }
  0x17   :  { %p266_p10 = pnand %p264_p9, %p261_p8 }
  0x19   :  { %269 = shalt.err (!%p266_p10)
}
  0x1a   :  { %s270_s16 = scalar_lea.vmem %s35_s8, 256  ;;  %p275_p12 = scmp.lt.s32.totalorder %s35_s8, %s35_s8 }
  0x1b   :  { %p271_p11 = scmp.ne.s32.totalorder %s35_s8, %s270_s16  ;;  %p276_p13 = scmp.lt.s32.totalorder %s270_s16, %s270_s16 }
  0x1d   :  { %p277_p0 = por %p276_p13, %p275_p12 }
  0x1f   :  { %p278_p1 = pnand %p277_p0, %p271_p11 }
  0x21   :  { %281 = shalt.err (!%p278_p1)
}
  0x22   :  { %s314_s0 = smov 64   ;;  %s315_s17 = smov 4  }
  0x23   :  { %40 = dma.hbm_to_vmem [thread:$0]  %s409_s3, 256, %s35_s8, [#allocation7], %s314_s0, %s314_s0, %s315_s17  }
  0x24   :  { %304 = dma.done.wait [#allocation4], 256  }
  0x25   :  { %305 = vsyncadd [#allocation4], 4294967040 }
  0x26   :  { %306 = dma.done.wait [#allocation7], 256  }
  0x27   :  { %307 = vsyncadd [#allocation7], 4294967040  ;;  %vm56_vm0 = vcmask 261120   ;;  %v54_v0 = vld [vmem:[#allocation3] sm:$0xff]  ;;  %v55_v1 = vld [vmem:[#allocation3 + $0x8] sm:$0xff]  ;;  %v316_v15 = vmov 0.0  }
  0x28   :  { %v57_v2 = vsel %vm56_vm0, %v54_v0, 0.0  ;;  %v60_v3 = vsel %vm56_vm0, %v55_v1, 0.0  ;;  %v232_v14 = vld [vmem:[#allocation6] sm:$0xff]   ;;  %215 = vmatprep.subr.bf16.mxu0 %v316_v15  ;;  %v233_v16 = vld [vmem:[#allocation6 + $0x8] sm:$0xff]   ;;  %vm317_vm1 = vmmov 0   ;;  %vm181_vm2 = vcmask 781312  }
  0x29   :  { %58 = vadd.xlane.f32.xlu0 %v57_v2  ;;  %216 = vmatpush3.bf16.msra.mxu0 %v232_v14  ;;  %v202_v25 = vld [vmem:[%s407_s1] ss:$0 sm:$0xff]  ;;  %s318_s1 = smov [#allocation8]  }
  0x2a   :  { %219 = vmatprep.mubr.msk.bf16.mxu0 %vm317_vm1, %v316_v15  ;;  %217 = vmatprep.subr.bf16.mxu0 %v316_v15  ;;  %v203_v29 = vld [vmem:[%s408_s2] ss:$0 sm:$0xff]  ;;  %s189_s2 = sshll.u32 %s318_s1, 4  ;;  %s190_s2 = int_to_ptr.vmem [resolvable:$true] %s189_s2 }
  0x2b   :  { %v204_v35 = vld [vmem:[%s410_s4] ss:$0 sm:$0xff]  ;;  %s282_s25 = scalar_lea.vmem %s190_s2, 128  ;;  %p287_p3 = scmp.lt.s32.totalorder %s190_s2, %s190_s2 }
  0x2c   :  { %p283_p2 = scmp.ne.s32.totalorder %s190_s2, %s282_s25  ;;  %p288_p4 = scmp.lt.s32.totalorder %s282_s25, %s282_s25 }
  0x2d   :  { %61 = vadd.xlane.f32.xlu0 %v60_v3  ;;  %218 = vmatpush3.bf16.msra.mxu0 %v233_v16 }
  0x2e   :  { %p289_p5 = por %p288_p4, %p287_p3 }
  0x30   :  { %p290_p6 = pnand %p289_p5, %p283_p2 }
  0xb6   :  { %v59_v4 = vpop.xlane.xlu0 %58 }
  0xb7   :  { %v64_v5 = vmul.f32 0.03125, %v59_v4 }
  0xb9   :  { %v66_v6 = vsub.f32 %v54_v0, %v64_v5 }
  0xba   :  { %v62_v7 = vpop.xlane.xlu0 %61 }
  0xbb   :  { %v65_v8 = vmul.f32 0.03125, %v62_v7  ;;  %v68_v9 = vmul.f32 %v66_v6, %v66_v6 }
  0xbd   :  { %v67_v10 = vsub.f32 %v55_v1, %v65_v8  ;;  %v70_v11 = vsel %vm56_vm0, %v68_v9, 0.0 }
  0xbe   :  { %71 = vadd.xlane.f32.xlu1 %v70_v11 }
  0xbf   :  { %v69_v12 = vmul.f32 %v67_v10, %v67_v10 }
  0xc1   :  { %v73_v13 = vsel %vm56_vm0, %v69_v12, 0.0 }
  0xc2   :  { %74 = vadd.xlane.f32.xlu1 %v73_v13 }
 0x14b   :  { %v72_v17 = vpop.xlane.xlu1 %71 }
 0x14c   :  { %v76_v18 = vmul.f32 0.03125, %v72_v17 }
 0x14e   :  { %v78_v19 = vadd.f32 1e-05, %v76_v18 }
 0x14f   :  { %v75_v20 = vpop.xlane.xlu1 %74 }
 0x150   :  { %234 = vrsqrt.f32 %v78_v19  ;;  %v77_v21 = vmul.f32 0.03125, %v75_v20 }
 0x152   :  { %v79_v22 = vadd.f32 1e-05, %v77_v21 }
 0x154   :  { %236 = vrsqrt.f32 %v79_v22 }
 0x15a   :  { %v235_v23 = vpop.eup %234 }
 0x15b   :  { %v82_v24 = vmul.f32 %v235_v23, %v66_v6 }
 0x15d   :  { %v91_v27 = vmul.f32 %v202_v25, %v82_v24 }
 0x15e   :  { %v237_v26 = vpop.eup %236 }
 0x15f   :  { %v83_v28 = vmul.f32 %v237_v26, %v67_v10  ;;  %v100_v31 = vadd.f32 %v203_v29, %v91_v27 }
 0x161   :  { %v92_v30 = vmul.f32 %v202_v25, %v83_v28 }
 0x163   :  { %v101_v32 = vadd.f32 %v203_v29, %v92_v30 }
 0x165   :  { %v102_v33 = vpack.c.bf16 %v101_v32, %v100_v31 }
 0x167   :  { %103 = vst.msk [vmem:[#allocation2] sm:$0xff] %vm56_vm0, %v102_v33 }
 0x16e   :  { %v104_v34 = vld [vmem:[#allocation2] sm:$0xff] }
 0x16f   :  { %220 = vmatmul.mubr.msk.bf16.vlgmr.msra.gmra.mrb[0].mxu0 %vm56_vm0, %v104_v34 }
 0x242   :  { %v166_v36 = vpop.f32.mrb[0].mxu0 }
 0x243   :  { %v167_v37 = vadd.f32 %v204_v35, %v166_v36  ;;  %v221_v38 = vpop.f32.mrb[1].mxu0 }
 0x244   :  { %v169_v39 = vpop.f32.mrb[2].mxu0 }
 0x245   :  { %v210_v40 = vpack.c.bf16 %v167_v37, %v167_v37  ;;  %v170_v41 = vadd.f32 %v204_v35, %v169_v39  ;;  %v222_v42 = vpop.f32.mrb[3].mxu0 }
 0x247   :  { %v211_v43 = vpack.c.bf16 %v170_v41, %v170_v41  ;;  %182 = vst.msk [vmem:[#allocation8] sm:$0xf] %vm181_vm2, %v210_v40 }
 0x249   :  { %183 = vst.msk [vmem:[#allocation8 + $0x4] sm:$0xf] %vm181_vm2, %v211_v43 }
 0x24a   :  { %293 = shalt.err (!%p290_p6)
}
 0x24b   :  { %s294_s27 = scalar_lea.hbm %s411_s5, 128 }
 0x24c   :  { %p295_p7 = scmp.ne.s32.totalorder %s411_s5, %s294_s27  ;;  %p298_p8 = scmp.lt.u32.totalorder %s294_s27, %s411_s5 }
 0x24e   :  { %p300_p9 = pnand %p298_p8, %p295_p7 }
 0x250   :  { %303 = shalt.err (!%p300_p9)
}
 0x251   :  { %195 = dma.vmem_to_hbm [thread:$0]  %s190_s2, 128, %s411_s5, [#allocation5], %s314_s0, %s314_s0, %s315_s17  }
 0x252   :  { %308 = dma.done.wait [#allocation5], 128  }
 0x253   :  { %309 = vsyncadd [#allocation5], 4294967168 }
 0x254   :  { %199 = vsyncpa [#allocation4], 1 }
 0x255   :  { %200 = vsyncpa [#allocation7], 1 }
 0x256   :  { %201 = vsyncpa [#allocation5], 1 }

</bundles_post_ra>
